<compile_context>
chip_gen: v5e
topology: v5e:2x2
jax: 0.10.0
libtpu: 0.0.40
codegen_flags: <defaults>
</compile_context>

<pallas_src>
import functools

import jax
import jax.numpy as jnp
from jax.experimental import pallas as pl
from jax.experimental.pallas import tpu as pltpu


def _channel_mixer_v_kernel(x_ref, w_ref, b_ref, o_ref, *, tile_b):
    # x_ref / o_ref: (tile_b, hdim, TILE_HW) tile (channels on sublanes, pixels on lanes).
    # w_ref: (hdim, hdim) fused channel-mixing matrix; b_ref: (hdim, 1) f32 fused bias.
    w = w_ref[...]
    b = b_ref[...]
    for bb in range(tile_b):  # static, small (<= 8)
        y = jnp.dot(w, x_ref[bb], preferred_element_type=jnp.float32) + b
        o_ref[bb] = y.astype(o_ref.dtype)


def _fuse_weights(w1, b1, w2, b2, hdim, c):
    """Pre-compose mixer1/mixer2 (1x1 convs) into one (hdim, hdim) matrix + (hdim, 1) bias."""
    m = hdim - c
    w1f = w1[:, :, 0, 0].astype(jnp.float32)
    w2f = w2[:, :, 0, 0].astype(jnp.float32)
    b1f = b1.astype(jnp.float32)
    b2f = b2.astype(jnp.float32)
    wf = jnp.zeros((hdim, hdim), jnp.float32)
    bf = jnp.zeros((hdim,), jnp.float32)
    if m <= c:
        # Head rows (untouched by mixer2) come straight from mixer1.
        wf = wf.at[:m, :c].set(w1f[:m])
        bf = bf.at[:m].set(b1f[:m])
        ov = c - m  # overlapping channels: mixer2 sees mixer1's output there
        if ov > 0:
            wf = wf.at[m:, :c].set(w2f[:, :ov] @ w1f[m:c])
            bf = bf.at[m:].set(w2f[:, :ov] @ b1f[m:c] + b2f)
        else:
            bf = bf.at[m:].set(b2f)
        wf = wf.at[m:, c:].set(w2f[:, ov:])
    else:
        # Disjoint segments with an untouched pass-through band x[c:m].
        wf = wf.at[:c, :c].set(w1f)
        bf = bf.at[:c].set(b1f)
        wf = wf.at[c:m, c:m].set(jnp.eye(m - c, dtype=jnp.float32))
        wf = wf.at[m:, m:].set(w2f)
        bf = bf.at[m:].set(b2f)
    return wf, bf.reshape(hdim, 1)


def _vmem_capacity_bytes():
    """Physical VMEM per core; conservative (v7x-sized) fallback if the query fails."""
    try:
        cap = int(pltpu.get_tpu_info().vmem_capacity_bytes)
        if cap > 0:
            return cap
    except Exception:
        pass
    return 64 << 20


def _estimate_vmem(tile_b, tile_hw, hdim, itemsize):
    """Honest per-pipeline VMEM estimate for this kernel."""
    act = tile_b * hdim * tile_hw * itemsize        # one activation tile (in or out)
    f32_y = hdim * tile_hw * 4                      # live f32 matmul result per batch slice
    weights = (hdim * hdim + hdim) * 4
    # in + out tiles double-buffered, one live f32 intermediate (x2 safety), weights x2.
    return 4 * act + 2 * f32_y + 2 * weights


def _select_tiles(B, HW, hdim, itemsize, budget_bytes):
    """Largest lane tile (multiple of 128 or full HW) under budget; batch-block small H*W;
    keep >=2 total grid steps so v7x megacore sharding has work for both cores."""
    cands = sorted({HW} | {t for t in range(128, HW + 1, 128) if HW % t == 0})
    tile_hw = cands[0]
    for t in cands:
        if _estimate_vmem(1, t, hdim, itemsize) <= budget_bytes:
            tile_hw = t
    tile_b = 1
    if tile_hw == HW:
        # H*W is small: block over batch too so per-step DMAs stay large.
        for tb in range(2, min(B, 8) + 1):
            if B % tb == 0 and _estimate_vmem(tb, tile_hw, hdim, itemsize) <= budget_bytes:
                tile_b = tb
    while (B // tile_b) * (HW // tile_hw) < 2:
        if tile_b > 1:
            tile_b = max(d for d in range(1, tile_b) if B % d == 0)
        else:
            smaller = [t for t in cands if t < tile_hw]
            if not smaller:
                break
            tile_hw = smaller[-1]
    return tile_b, tile_hw


def channel_mixer_v(x_nchw, w1, b1, w2, b2, *, ratio=2 / 3, tile_hw=None, tile_b=None):
    """x_nchw: (B, hdim, H, W); w1/w2: (c, c, 1, 1) PyTorch conv weights; b1/b2: (c,)."""
    B, hdim, H, W = x_nchw.shape
    c = int(hdim * ratio)  # mirror the PyTorch module's exact channel-split expression
    assert w1.shape == (c, c, 1, 1) and w2.shape == (c, c, 1, 1)
    HW = H * W
    itemsize = x_nchw.dtype.itemsize

    # NCHW already has H*W contiguous last -> free reshape, no transpose.
    x_flat = x_nchw.reshape(B, hdim, HW)

    # Host-side algebraic fusion of both 1x1 convs into one channel-mixing matrix.
    w_full, b_full = _fuse_weights(w1, b1, w2, b2, hdim, c)
    w_full = w_full.astype(x_nchw.dtype)

    # Per-generation VMEM budget (v5e/v6e: 128 MiB physical, v7x: 64 MiB).
    phys_vmem = _vmem_capacity_bytes()
    cap = min(phys_vmem * 3 // 4, 100 << 20)

    auto_tb, auto_thw = _select_tiles(B, HW, hdim, itemsize, budget_bytes=cap // 2)
    if tile_hw is None:
        tile_hw = auto_thw
    if tile_b is None:
        tile_b = auto_tb
    assert HW % tile_hw == 0, "H*W must be divisible by the lane tile"
    assert B % tile_b == 0, "B must be divisible by the batch tile"

    needed = _estimate_vmem(tile_b, tile_hw, hdim, itemsize)
    vmem_limit = int(min(cap, max(32 << 20, needed + (8 << 20))))

    grid = (B // tile_b, HW // tile_hw)
    kernel = functools.partial(_channel_mixer_v_kernel, tile_b=tile_b)

    out_flat = pl.pallas_call(
        kernel,
        out_shape=jax.ShapeDtypeStruct((B, hdim, HW), x_nchw.dtype),
        grid_spec=pltpu.PrefetchScalarGridSpec(
            num_scalar_prefetch=0,
            grid=grid,
            in_specs=[
                pl.BlockSpec((tile_b, hdim, tile_hw), lambda b, j: (b, 0, j)),
                pl.BlockSpec((hdim, hdim), lambda b, j: (0, 0)),
                pl.BlockSpec((hdim, 1), lambda b, j: (0, 0)),
            ],
            out_specs=pl.BlockSpec((tile_b, hdim, tile_hw), lambda b, j: (b, 0, j)),
        ),
        compiler_params=pltpu.CompilerParams(
            dimension_semantics=("parallel", "parallel"),
            vmem_limit_bytes=vmem_limit,
        ),
    )(x_flat, w_full, b_full)

    return out_flat.reshape(B, hdim, H, W)


def _reference(x_nchw, w1, b1, w2, b2, *, ratio=2 / 3):
    """Pure-JAX reference mirroring the PyTorch forward (unfused)."""
    B, hdim, H, W = x_nchw.shape
    c = int(hdim * ratio)

    def conv1x1(x, w, b):  # x: (B, c, H, W)
        y = jnp.einsum('bihw,oi->bohw', x, w[:, :, 0, 0])
        return y + b.reshape(1, c, 1, 1)

    x = jnp.concatenate([conv1x1(x_nchw[:, :c], w1, b1), x_nchw[:, c:]], axis=1)
    return jnp.concatenate([x[:, :hdim - c], conv1x1(x[:, hdim - c:], w2, b2)], axis=1)


def _run_case(key, B, hdim, H, W, ratio):
    c = int(hdim * ratio)
    k_x, k_w1, k_b1, k_w2, k_b2 = jax.random.split(key, 5)
    x = jax.random.normal(k_x, (B, hdim, H, W), dtype=jnp.float32)
    bound = 1.0 / jnp.sqrt(c)
    w1 = jax.random.uniform(k_w1, (c, c, 1, 1), minval=-bound, maxval=bound, dtype=jnp.float32)
    b1 = jax.random.uniform(k_b1, (c,), minval=-bound, maxval=bound, dtype=jnp.float32)
    w2 = jax.random.uniform(k_w2, (c, c, 1, 1), minval=-bound, maxval=bound, dtype=jnp.float32)
    b2 = jax.random.uniform(k_b2, (c,), minval=-bound, maxval=bound, dtype=jnp.float32)

    out = jax.block_until_ready(channel_mixer_v(x, w1, b1, w2, b2, ratio=ratio))
    ref = _reference(x, w1, b1, w2, b2, ratio=ratio)
    assert out.shape == (B, hdim, H, W)
    # Slightly relaxed tolerance: the fused weight pre-composition changes f32 summation
    # order vs. the sequential two-conv reference (~1e-6 absolute differences).
    assert jnp.allclose(out, ref, atol=2e-5, rtol=1e-4), \
        f"mismatch vs JAX reference (hdim={hdim})"


if __name__ == "__main__":
    key = jax.random.PRNGKey(0)
    k1, k2 = jax.random.split(key)

    # Small overlapping case (2c > hdim), matching the original module defaults.
    _run_case(k1, B=2, hdim=6, H=16, W=16, ratio=2 / 3)
    # Larger, lane/sublane-friendly case (hdim=96, c=64) to exercise tiled shapes.
    _run_case(k2, B=2, hdim=96, H=16, W=16, ratio=2 / 3)

    print("KERNEL_OK")
</pallas_src>

<mosaic_0001>
module attributes {stable_mosaic.version = 11 : i64} {
  func.func @_channel_mixer_v_kernel(%arg0: i32, %arg1: i32, %arg2: memref<1x6x256xf32, #tpu.memory_space<vmem>>, %arg3: memref<6x6xf32, #tpu.memory_space<vmem>>, %arg4: memref<6x1xf32, #tpu.memory_space<vmem>>, %arg5: memref<1x6x256xf32, #tpu.memory_space<vmem>>) attributes {dimension_semantics = [#tpu.dimension_semantics<parallel>, #tpu.dimension_semantics<parallel>], iteration_bounds = array<i64: 2, 1>, scalar_prefetch = 0 : i64, scratch_operands = 0 : i64, tpu.core_type = #tpu.core_type<tc>, window_params = [{transform_indices = @transform_0, window_bounds = array<i64: 1, 6, 256>}, {pipeline_mode = #tpu.pipeline_mode<synchronous>, transform_indices = @transform_1, window_bounds = array<i64: 6, 6>}, {pipeline_mode = #tpu.pipeline_mode<synchronous>, transform_indices = @transform_2, window_bounds = array<i64: 6, 1>}, {transform_indices = @transform_3, window_bounds = array<i64: 1, 6, 256>}]} {
    %c0 = arith.constant 0 : index
    %c0_0 = arith.constant 0 : index
    %0 = vector.load %arg3[%c0, %c0_0] : memref<6x6xf32, #tpu.memory_space<vmem>>, vector<6x6xf32>
    %c0_1 = arith.constant 0 : index
    %c0_2 = arith.constant 0 : index
    %1 = vector.load %arg4[%c0_1, %c0_2] : memref<6x1xf32, #tpu.memory_space<vmem>>, vector<6x1xf32>
    %c0_3 = arith.constant 0 : index
    %c0_4 = arith.constant 0 : index
    %c0_5 = arith.constant 0 : index
    %2 = vector.load %arg2[%c0_3, %c0_4, %c0_5] : memref<1x6x256xf32, #tpu.memory_space<vmem>>, vector<1x6x256xf32>
    %3 = vector.shape_cast %2 : vector<1x6x256xf32> to vector<6x256xf32>
    %cst = arith.constant dense<0.000000e+00> : vector<6x256xf32>
    %4 = tpu.matmul %0, %3, %cst {dimension_numbers = #tpu.dot_dimension_numbers<[1], [0], [0], [1], [0, 0, 1, 1], [], []>} : vector<6x6xf32>, vector<6x256xf32>, vector<6x256xf32> -> vector<6x256xf32>
    %5 = vector.broadcast %1 : vector<6x1xf32> to vector<6x256xf32>
    %6 = arith.addf %4, %5 : vector<6x256xf32>
    %c0_6 = arith.constant 0 : index
    %c0_7 = arith.constant 0 : index
    %c0_8 = arith.constant 0 : index
    %7 = vector.load %arg5[%c0_6, %c0_7, %c0_8] : memref<1x6x256xf32, #tpu.memory_space<vmem>>, vector<1x6x256xf32>
    %8 = vector.shape_cast %7 : vector<1x6x256xf32> to vector<6x256xf32>
    %9 = vector.shape_cast %6 : vector<6x256xf32> to vector<1x6x256xf32>
    tpu.vector_store %arg5[%c0_6, %c0_7, %c0_8], %9 {strides = array<i32>} : memref<1x6x256xf32, #tpu.memory_space<vmem>>, vector<1x6x256xf32>,
    return
  }
  func.func @transform_0(%arg0: i32, %arg1: i32) -> (i32, i32, i32) {
    %c0_i32 = arith.constant 0 : i32
    %c0_i32_0 = arith.constant 0 : i32
    return %arg0, %c0_i32, %arg1 : i32, i32, i32
  }
  func.func @transform_1(%arg0: i32, %arg1: i32) -> (i32, i32) {
    %c0_i32 = arith.constant 0 : i32
    %c0_i32_0 = arith.constant 0 : i32
    %c0_i32_1 = arith.constant 0 : i32
    return %c0_i32, %c0_i32_0 : i32, i32
  }
  func.func @transform_2(%arg0: i32, %arg1: i32) -> (i32, i32) {
    %c0_i32 = arith.constant 0 : i32
    %c0_i32_0 = arith.constant 0 : i32
    %c0_i32_1 = arith.constant 0 : i32
    return %c0_i32, %c0_i32_0 : i32, i32
  }
  func.func @transform_3(%arg0: i32, %arg1: i32) -> (i32, i32, i32) {
    %c0_i32 = arith.constant 0 : i32
    %c0_i32_0 = arith.constant 0 : i32
    return %arg0, %c0_i32, %arg1 : i32, i32, i32
  }
}

</mosaic_0001>

<bundles_post_ra>
// kernel: tpu_custom_call.1
= control target key start
LH: loop header
LB: loop body
LE: loop exit
PB: predicated region body
PF: predicated region fallthrough
CT: control target
= control target key end

     0   :  { %s447_s12 = smov 0   ;;  %s449_s13 = smov 0   ;;  %s486_s0 = inlined_call_operand.vmem [shape: f32[2,6,256], index: 0, kind: input, shape index: {}]   ;;  %s487_s1 = inlined_call_operand.vmem [shape: f32[6,6], index: 1, kind: input, shape index: {}]   ;;  %s488_s2 = inlined_call_operand.vmem [shape: f32[6,1], index: 2, kind: input, shape index: {}]   ;;  %s489_s3 = inlined_call_operand.vmem [shape: f32[2,6,256], index: 3, kind: output, shape index: {}]  }
   0x1   :  { %s451_s14 = smov 0  }
   0x2 LB: > { %s25_s15 = sadd.s32 1, %s420_s13  ;;  %p363_p0 = scmp.ge.s32.totalorder %s424_s14, 1  ;;  %s424_s14 = sphi %s451_s14, %s13_s14   ;;  %s420_s13 = sphi %s449_s13, %s491_s13   ;;  %s416_s12 = sphi %s447_s12, %s490_s12  }
   0x3   : > { %p27_p1 = scmp.ge.s32.totalorder %s25_s15, 2  ;;  %p158_p2 = scmp.lt.s32.totalorder %s424_s14, 3 }
   0x5   : > { %s493_s15 = smov (%p27_p1, %s25_s15), 0  ;;  %p159_p3 = pnand %p363_p0, %p158_p2 }
   0x6   : > { %p191_p4 = scmp.lt.s32.totalorder (!%p159_p3), %s416_s12, 1 }
   0x7   : > { %162 = sbr.rel (%p159_p3) target bundleno = 147 (0x93), region = 32 }
   0xc   : > { %v426_v0 = vmov 0   ;;  %v211_v1 = vld [vmem:[%s488_s2] sm:$0x3f]  ;;  %s495_s12 = smov (!%p191_p4, %s416_s12), 1  ;;  %vm223_vm0 = vcmask 1045504   ;;  %vm219_vm1 = vcmask 48128  }
   0xd   : > { %401 = vset.pattern.permute.xlu0 %v426_v0  ;;  %s374_s18 = sshll.u32 %s495_s12, 4  ;;  %v210_v2 = vld [vmem:[%s487_s1] sm:$0x3f] }
   0xe   : > { %216 = vperm.xlu0 %401, %v211_v1   ;;  %s198_s21 = scalar_lea.vmem %s486_s0, %s374_s18  ;;  %s208_s26 = scalar_lea.vmem %s489_s3, %s374_s18 }
   0xf   : > { %v212_v3 = vld [vmem:[%s198_s21] sm:$0x3f]  ;;  %v213_v4 = vld [vmem:[%s198_s21 + $0x8] sm:$0x3f] }
  0x10   : > { %368 = vmatpush.msk.msra.mxu0 %vm223_vm0, %v212_v3  ;;  %370 = vmatpush.msk.msra.mxu1 %vm223_vm0, %v213_v4 }
  0x11   : > { %369 = vmatmul.msk.f32.vlgmr.msra.gmra.mxu0 %vm219_vm1, %v210_v2  ;;  %371 = vmatmul.msk.f32.vlgmr.msra.gmra.mxu1 %vm219_vm1, %v210_v2 }
  0x80   : > { %v217_v5 = vpop.permute.xlu0 %216 }
  0x8e   : > { %v247_v6 = vpop.f32.mrf.mxu0  ;;  %v267_v7 = vpop.f32.mrf.mxu1 }
  0x8f   : > { %v248_v8 = vadd.f32 %v247_v6, %v217_v5  ;;  %v268_v9 = vadd.f32 %v267_v7, %v217_v5 }
  0x91   : > { %270 = vst [vmem:[%s208_s26] sm:$0x3f] %v248_v8 }
  0x92   : > { %271 = vst [vmem:[%s208_s26 + $0x8] sm:$0x3f] %v268_v9 }
  0x93 PF: > { %s13_s14 = sadd.s32 1, %s424_s14   ;;  %s490_s12 = smov %s420_s13 }
  0x94   : > { %p10_p5 = scmp.ge.s32.totalorder %s13_s14, 4   ;;  %s491_s13 = smov %s493_s15 }
  0x96   :  { %12 = sbr.rel (!%p10_p5) target bundleno = 2 (0x2), region = 62 }

</bundles_post_ra>
